<compile_context>
chip_gen: v7x
topology: tpu7x:2x2x1
jax: 0.10.0
libtpu: 0.0.40
codegen_flags: <defaults>
</compile_context>

<pallas_src>
import jax
import jax.numpy as jnp
from jax import lax
from jax.experimental import pallas as pl
from jax.experimental.pallas import tpu as pltpu


def _round_up(v: int, m: int) -> int:
    return ((v + m - 1) // m) * m


def _pad2d(a, rows: int, cols: int):
    pr, pc = rows - a.shape[0], cols - a.shape[1]
    if pr == 0 and pc == 0:
        return a                      # already aligned: skip the HBM copy
    return jnp.pad(a, ((0, pr), (0, pc)))


# Weight stays in the PyTorch nn.Linear (out_features, in_features) = (N, K)
# layout; contraction is over the last dim of both operands, so W^T is never
# materialized in HBM.
_CONTRACT_LAST = (((1,), (1,)), ((), ()))


# ------------------------------- kernels ------------------------------------
def _ia3_single_k_kernel(x_ref, w_ref, b_ref, a_ref, o_ref):
    # x:(tm,K)  w:(tn,K)  b,a:(1,tn)  o:(tm,tn) — whole K in one block.
    y = lax.dot_general(x_ref[...], w_ref[...], _CONTRACT_LAST,
                        preferred_element_type=jnp.float32)
    y = (y + b_ref[...].astype(jnp.float32)) * a_ref[...].astype(jnp.float32)
    o_ref[...] = y.astype(o_ref.dtype)


def _linear_single_k_kernel(x_ref, w_ref, b_ref, o_ref):
    y = lax.dot_general(x_ref[...], w_ref[...], _CONTRACT_LAST,
                        preferred_element_type=jnp.float32)
    o_ref[...] = (y + b_ref[...].astype(jnp.float32)).astype(o_ref.dtype)


def _ia3_multi_k_kernel(x_ref, w_ref, b_ref, a_ref, o_ref, acc_ref):
    k = pl.program_id(2)
    part = lax.dot_general(x_ref[...], w_ref[...], _CONTRACT_LAST,
                           preferred_element_type=jnp.float32)

    @pl.when(k == 0)
    def _():
        acc_ref[...] = part           # overwrite: no zero-fill + reload pass

    @pl.when(k > 0)
    def _():
        acc_ref[...] += part

    @pl.when(k == pl.num_programs(2) - 1)
    def _():
        y = (acc_ref[...] + b_ref[...].astype(jnp.float32)) \
            * a_ref[...].astype(jnp.float32)
        o_ref[...] = y.astype(o_ref.dtype)


def _linear_multi_k_kernel(x_ref, w_ref, b_ref, o_ref, acc_ref):
    k = pl.program_id(2)
    part = lax.dot_general(x_ref[...], w_ref[...], _CONTRACT_LAST,
                           preferred_element_type=jnp.float32)

    @pl.when(k == 0)
    def _():
        acc_ref[...] = part

    @pl.when(k > 0)
    def _():
        acc_ref[...] += part

    @pl.when(k == pl.num_programs(2) - 1)
    def _():
        o_ref[...] = (acc_ref[...] + b_ref[...].astype(jnp.float32)
                      ).astype(o_ref.dtype)


# ------------------------------- helpers ------------------------------------
def fold_ia3_adapter(weight, bias, adapter):
    """Fold the IA^3 adapter into (weight, bias) once, offline (inference).

    W_eff[o, :] = W[o, :] * a[o];  b_eff = b * a.  Then call
    ia3_linear(x, W_eff, b_eff, None): one fewer input stream + VPU multiply.
    """
    a = adapter.reshape(-1)
    return weight * a[:, None], bias * a


# ------------------------------- wrapper ------------------------------------
def ia3_linear(x, weight, bias, adapter=None, *, tm=512, tn=512, tk=512,
               matmul_dtype=None, out_dtype=None, w_buffers=2):
    """IA^3-wrapped nn.Linear forward: (x @ W^T + b) * adapter.

    x:       [..., in_features]
    weight:  [out_features, in_features]  (native layout, never transposed)
    bias:    [out_features]
    adapter: [1, out_features] or None (adapter already folded / disabled)
    matmul_dtype: cast GEMM operands only (jnp.bfloat16 recommended on
             v5e/v6e/v7x; f32 accumulate + f32 epilogue always). Default None
             keeps exact f32 semantics of the reference module.
    w_buffers: >2 enables deeper pipelining on the W stream (pl.Buffered).
    Returns [..., out_features] in out_dtype (default x.dtype).
    """
    orig_dtype = x.dtype
    if out_dtype is None:
        out_dtype = orig_dtype
    lead_shape = x.shape[:-1]
    in_features = x.shape[-1]
    out_features = weight.shape[0]

    x2d = x.reshape(-1, in_features)
    M, K = x2d.shape
    N = out_features

    # ---- tile sizes / padded shapes (ragged-safe, MXU & lane aligned) ------
    N_pad = _round_up(N, 128)
    tn_eff = min(tn, N_pad)
    N_pad = _round_up(N_pad, tn_eff)

    M_pad = _round_up(M, 8)
    tm_eff = min(tm, M_pad)
    M_pad = _round_up(M_pad, tm_eff)

    if K <= tk:
        tk_eff, K_pad = K, K              # single K step: no accumulator
    else:
        tk_eff = tk
        K_pad = _round_up(K, tk_eff)

    # v7x shards "parallel" grid axes over 2 TensorCores: make sure there are
    # >= 2 (i, j) tiles so neither core idles on small shapes.
    if (M_pad // tm_eff) * (N_pad // tn_eff) == 1:
        if M_pad >= 16:
            tm_eff = _round_up(M_pad // 2, 8)
            M_pad = _round_up(M_pad, tm_eff)
        elif N_pad >= 256:
            tn_eff = _round_up(N_pad // 2, 128)
            N_pad = _round_up(N_pad, tn_eff)

    grid_i = M_pad // tm_eff
    grid_j = N_pad // tn_eff
    grid_k = K_pad // tk_eff

    # ---- operand prep (zero-padding is exact; skipped when aligned) --------
    x_p = _pad2d(x2d, M_pad, K_pad)
    w_p = _pad2d(weight, N_pad, K_pad)           # stays (N, K) — no transpose
    b_p = _pad2d(bias.reshape(1, N), 1, N_pad)

    has_adapter = adapter is not None
    a_p = _pad2d(adapter.reshape(1, N), 1, N_pad) if has_adapter else None

    if matmul_dtype is not None and x_p.dtype != matmul_dtype:
        x_p = x_p.astype(matmul_dtype)
    if matmul_dtype is not None and w_p.dtype != matmul_dtype:
        w_p = w_p.astype(matmul_dtype)
    # TODO(synk): for static inference weights, pre-cast / pre-quantize W once
    # at load time (bf16; fp8 on v7x, int8 on v5e/v6e) instead of per call.

    # ---- VMEM budget (explicit scoped limit, capped under v7x 64 MiB) ------
    in_itemsize = x_p.dtype.itemsize
    out_itemsize = jnp.dtype(out_dtype).itemsize
    vmem_bytes = (
        2 * tm_eff * tk_eff * in_itemsize                    # x, double-buf
        + max(2, w_buffers) * tn_eff * tk_eff * w_p.dtype.itemsize   # W
        + 2 * tm_eff * tn_eff * out_itemsize                 # out, double-buf
        + (tm_eff * tn_eff * 4 if grid_k > 1 else 0)         # f32 accumulator
        + 4 * 2 * tn_eff * 4                                 # bias/adapter
    )
    vmem_limit = int(min(max(2 * vmem_bytes, 16 << 20), 48 << 20))

    # ---- cost estimate: count the real re-stream factors --------------------
    bytes_accessed = int(
        x_p.size * x_p.dtype.itemsize * grid_j       # x re-read per j tile
        + w_p.size * w_p.dtype.itemsize * grid_i     # W re-read per i tile
        + b_p.size * b_p.dtype.itemsize * grid_i
        + (a_p.size * a_p.dtype.itemsize * grid_i if has_adapter else 0)
        + M_pad * N_pad * out_itemsize)
    cost = pl.CostEstimate(flops=2 * M * K * N, transcendentals=0,
                           bytes_accessed=bytes_accessed)

    # ---- specs / grid --------------------------------------------------------
    w_kwargs = {}
    if w_buffers > 2:
        w_kwargs["pipeline_mode"] = pl.Buffered(w_buffers)

    if grid_k == 1:
        grid = (grid_i, grid_j)
        dims = ("parallel", "parallel")
        in_specs = [
            pl.BlockSpec((tm_eff, tk_eff), lambda i, j: (i, 0)),            # x
            pl.BlockSpec((tn_eff, tk_eff), lambda i, j: (j, 0), **w_kwargs),  # W (N,K)
            pl.BlockSpec((1, tn_eff), lambda i, j: (0, j)),                  # bias
        ]
        if has_adapter:
            in_specs.append(pl.BlockSpec((1, tn_eff), lambda i, j: (0, j)))  # IA^3
        out_spec = pl.BlockSpec((tm_eff, tn_eff), lambda i, j: (i, j))
        scratch = []
        kernel = _ia3_single_k_kernel if has_adapter else _linear_single_k_kernel
    else:
        grid = (grid_i, grid_j, grid_k)
        dims = ("parallel", "parallel", "arbitrary")
        in_specs = [
            pl.BlockSpec((tm_eff, tk_eff), lambda i, j, k: (i, k)),            # x
            pl.BlockSpec((tn_eff, tk_eff), lambda i, j, k: (j, k), **w_kwargs),  # W
            pl.BlockSpec((1, tn_eff), lambda i, j, k: (0, j)),                  # bias
        ]
        if has_adapter:
            in_specs.append(pl.BlockSpec((1, tn_eff), lambda i, j, k: (0, j)))  # IA^3
        out_spec = pl.BlockSpec((tm_eff, tn_eff), lambda i, j, k: (i, j))
        scratch = [pltpu.VMEM((tm_eff, tn_eff), jnp.float32)]
        kernel = _ia3_multi_k_kernel if has_adapter else _linear_multi_k_kernel

    args = (x_p, w_p, b_p) + ((a_p,) if has_adapter else ())

    out2d = pl.pallas_call(
        kernel,
        out_shape=jax.ShapeDtypeStruct((M_pad, N_pad), out_dtype),
        grid_spec=pltpu.PrefetchScalarGridSpec(
            num_scalar_prefetch=0,
            grid=grid,
            in_specs=in_specs,
            out_specs=out_spec,
            scratch_shapes=scratch),
        compiler_params=pltpu.CompilerParams(
            dimension_semantics=dims,
            vmem_limit_bytes=vmem_limit),
        cost_estimate=cost,
    )(*args)

    out2d = out2d[:M, :N]
    return out2d.reshape(*lead_shape, N)


if __name__ == "__main__":
    key = jax.random.PRNGKey(0)
    k_x, k_w, k_b, k_a = jax.random.split(key, 4)

    # --- small case matching the module spec (exact f32 path) ---------------
    batch, seq = 2, 8
    in_features, out_features = 32, 64

    x = jax.random.normal(k_x, (batch, seq, in_features), dtype=jnp.float32)
    # nn.Linear parameter shapes: weight [out, in], bias [out]
    weight = jax.random.normal(k_w, (out_features, in_features),
                               dtype=jnp.float32) * 0.05
    bias = jax.random.normal(k_b, (out_features,), dtype=jnp.float32) * 0.05
    # module __init__ sets adapter to ones; use a non-trivial value so the
    # scaling path is actually exercised.
    adapter = 1.0 + 0.1 * jax.random.normal(k_a, (1, out_features),
                                            dtype=jnp.float32)

    ref = (jnp.einsum("bsi,oi->bso", x, weight) + bias) * adapter.reshape(-1)

    out = jax.block_until_ready(ia3_linear(x, weight, bias, adapter))
    assert out.shape == (batch, seq, out_features)
    assert jnp.allclose(out, ref, atol=1e-5, rtol=1e-5)

    # --- bf16 GEMM operands (f32 accumulate/epilogue), looser tolerance -----
    out_bf = jax.block_until_ready(
        ia3_linear(x, weight, bias, adapter, matmul_dtype=jnp.bfloat16))
    assert jnp.allclose(out_bf, ref, atol=3e-2, rtol=3e-2)

    # --- adapter folded into (W, b) offline: inference fast path ------------
    w_eff, b_eff = fold_ia3_adapter(weight, bias, adapter)
    out_folded = jax.block_until_ready(ia3_linear(x, w_eff, b_eff, None))
    assert jnp.allclose(out_folded, ref, atol=1e-4, rtol=1e-4)

    # --- larger ragged case: M/N padding + K-axis accumulation --------------
    keys2 = jax.random.split(key, 8)
    b2n, s2n, K2, N2 = 3, 100, 640, 200          # M=300 (ragged), K>tk, N<tn
    x2 = jax.random.normal(keys2[4], (b2n, s2n, K2), dtype=jnp.float32)
    w2 = jax.random.normal(keys2[5], (N2, K2), dtype=jnp.float32) * 0.02
    bb2 = jax.random.normal(keys2[6], (N2,), dtype=jnp.float32) * 0.02
    a2 = 1.0 + 0.1 * jax.random.normal(keys2[7], (1, N2), dtype=jnp.float32)

    ref2 = (jnp.einsum("bsi,oi->bso", x2, w2) + bb2) * a2.reshape(-1)
    out2 = jax.block_until_ready(ia3_linear(x2, w2, bb2, a2))
    assert out2.shape == (b2n, s2n, N2)
    assert jnp.allclose(out2, ref2, atol=1e-3, rtol=1e-3)

    print("KERNEL_OK")
</pallas_src>

<mosaic_0001>
module attributes {stable_mosaic.version = 11 : i64} {
  func.func @_ia3_single_k_kernel(%arg0: i32, %arg1: i32, %arg2: memref<8x32xf32, #tpu.memory_space<vmem>>, %arg3: memref<128x32xf32, #tpu.memory_space<vmem>>, %arg4: memref<1x128xf32, #tpu.memory_space<vmem>>, %arg5: memref<1x128xf32, #tpu.memory_space<vmem>>, %arg6: memref<8x128xf32, #tpu.memory_space<vmem>>) attributes {dimension_semantics = [#tpu.dimension_semantics<parallel>, #tpu.dimension_semantics<parallel>], iteration_bounds = array<i64: 2, 1>, scalar_prefetch = 0 : i64, scratch_operands = 0 : i64, tpu.core_type = #tpu.core_type<tc>, window_params = [{transform_indices = @transform_0, window_bounds = array<i64: 8, 32>}, {transform_indices = @transform_1, window_bounds = array<i64: 128, 32>}, {transform_indices = @transform_2, window_bounds = array<i64: 1, 128>}, {transform_indices = @transform_3, window_bounds = array<i64: 1, 128>}, {transform_indices = @transform_4, window_bounds = array<i64: 8, 128>}]} {
    %c0 = arith.constant 0 : index
    %c0_0 = arith.constant 0 : index
    %0 = vector.load %arg2[%c0, %c0_0] : memref<8x32xf32, #tpu.memory_space<vmem>>, vector<8x32xf32>
    %c0_1 = arith.constant 0 : index
    %c0_2 = arith.constant 0 : index
    %1 = vector.load %arg3[%c0_1, %c0_2] : memref<128x32xf32, #tpu.memory_space<vmem>>, vector<128x32xf32>
    %cst = arith.constant dense<0.000000e+00> : vector<8x128xf32>
    %2 = tpu.matmul %0, %1, %cst {dimension_numbers = #tpu.dot_dimension_numbers<[1], [1], [0], [0], [0, 0, 1, 0], [], []>} : vector<8x32xf32>, vector<128x32xf32>, vector<8x128xf32> -> vector<8x128xf32>
    %c0_3 = arith.constant 0 : index
    %c0_4 = arith.constant 0 : index
    %3 = vector.load %arg4[%c0_3, %c0_4] : memref<1x128xf32, #tpu.memory_space<vmem>>, vector<1x128xf32>
    %4 = vector.broadcast %3 : vector<1x128xf32> to vector<8x128xf32>
    %5 = arith.addf %2, %4 : vector<8x128xf32>
    %c0_5 = arith.constant 0 : index
    %c0_6 = arith.constant 0 : index
    %6 = vector.load %arg5[%c0_5, %c0_6] : memref<1x128xf32, #tpu.memory_space<vmem>>, vector<1x128xf32>
    %7 = vector.broadcast %6 : vector<1x128xf32> to vector<8x128xf32>
    %8 = arith.mulf %5, %7 : vector<8x128xf32>
    %c0_7 = arith.constant 0 : index
    %c0_8 = arith.constant 0 : index
    %9 = vector.load %arg6[%c0_7, %c0_8] : memref<8x128xf32, #tpu.memory_space<vmem>>, vector<8x128xf32>
    tpu.vector_store %arg6[%c0_7, %c0_8], %8 {strides = array<i32>} : memref<8x128xf32, #tpu.memory_space<vmem>>, vector<8x128xf32>,
    return
  }
  func.func @transform_0(%arg0: i32, %arg1: i32) -> (i32, i32) {
    %c0_i32 = arith.constant 0 : i32
    %c0_i32_0 = arith.constant 0 : i32
    return %arg0, %c0_i32 : i32, i32
  }
  func.func @transform_1(%arg0: i32, %arg1: i32) -> (i32, i32) {
    %c0_i32 = arith.constant 0 : i32
    %c0_i32_0 = arith.constant 0 : i32
    return %arg1, %c0_i32 : i32, i32
  }
  func.func @transform_2(%arg0: i32, %arg1: i32) -> (i32, i32) {
    %c0_i32 = arith.constant 0 : i32
    %c0_i32_0 = arith.constant 0 : i32
    return %c0_i32, %arg1 : i32, i32
  }
  func.func @transform_3(%arg0: i32, %arg1: i32) -> (i32, i32) {
    %c0_i32 = arith.constant 0 : i32
    %c0_i32_0 = arith.constant 0 : i32
    return %c0_i32, %arg1 : i32, i32
  }
  func.func @transform_4(%arg0: i32, %arg1: i32) -> (i32, i32) {
    %c0_i32 = arith.constant 0 : i32
    return %arg0, %arg1 : i32, i32
  }
}

</mosaic_0001>

<bundles_post_ra>
// kernel: tpu_custom_call.1
= control target key start
LH: loop header
LB: loop body
LE: loop exit
PB: predicated region body
PF: predicated region fallthrough
CT: control target
= control target key end

     0   :  { %9 = vsyncpa [#allocation3], 0  ;;  %s1007_s0 = inlined_call_operand.vmem [shape: f32[16,32], index: 0, kind: input, shape index: {}]   ;;  %s1008_s1 = inlined_call_operand.vmem [shape: f32[128,32], index: 1, kind: input, shape index: {}]   ;;  %s1009_s2 = inlined_call_operand.vmem [shape: f32[1,128], index: 2, kind: input, shape index: {}]   ;;  %s1010_s3 = inlined_call_operand.vmem [shape: f32[1,128], index: 3, kind: input, shape index: {}]   ;;  %s1011_s4 = inlined_call_operand.hbm [shape: f32[16,128], index: 4, kind: output, shape index: {}]  }
   0x1   :  { %11 = vsyncpa [#allocation3 + $0x1], 0  ;;  %s818_s15 = smov 0   ;;  %s820_s16 = smov 0  }
   0x2   :  { %s822_s17 = smov 0   ;;  %s824_s18 = smov 0  }
   0x3   :  { %s826_s19 = smov 0   ;;  %s828_s20 = smov 0  }
   0x4 LB: > { %s534_s21 = sadd.s32 4294967295, %s787_s20   ;;  %s535_s22 = sadd.s32 4294967294, %s787_s20   ;;  %s787_s20 = sphi %s828_s20, %s17_s20   ;;  %s783_s19 = sphi %s826_s19, %s1020_s19   ;;  %s779_s18 = sphi %s824_s18, %s1019_s18   ;;  %s775_s17 = sphi %s822_s17, %s1018_s17   ;;  %s771_s16 = sphi %s820_s16, %s1017_s16   ;;  %s767_s15 = sphi %s818_s15, %s1016_s15  }
   0x5   : > { %s29_s23 = sadd.s32 1, %s783_s19  ;;  %s142_s24 = sadd.s32 1, %s775_s17 }
   0x6   : > { %p31_p0 = scmp.ge.s32.totalorder %s29_s23, 2  ;;  %p152_p1 = scmp.ne.s32.totalorder %s775_s17, %s771_s16 }
   0x7   : > { %p153_p2 = scmp.eq.s32.totalorder %s534_s21, 1  ;;  %p158_p3 = scmp.ne.s32.totalorder %s771_s16, %s767_s15 }
   0x8   : > { %s1022_s23 = smov (%p31_p0, %s29_s23), 0  ;;  %p159_p5 = scmp.eq.s32.totalorder %s535_s22, 1 }
   0x9   : > { %p858_p4 = por %p153_p2, %p152_p1  ;;  %s137_s26 = ssub.s32 %s783_s19, %s1022_s23 }
   0xa   : > { %p541_p6 = scmp.ge.s32.totalorder %s787_s20, 1  ;;  %p140_p7 = scmp.eq.s32.totalorder %s137_s26, 0 }
   0xb   : > { %p865_p8 = por %p159_p5, %p158_p3  ;;  %p205_p9 = scmp.lt.s32.totalorder %s787_s20, 3 }
   0xc   : > { %s871_s28 = scalar_select %p140_p7, %s775_s17, %s142_s24  }
   0xd   : > { %p206_p10 = pnand %p541_p6, %p205_p9 }
   0xe   : > { %v258_v0 = vld [vmem:[%s1008_s1] sm:$0xff] (!%p206_p10)  ;;  %v259_v1 = vld [vmem:[%s1008_s1 + $0x8] sm:$0xff] (!%p206_p10)  ;;  %vm281_vm0 = vcmask (!%p206_p10), 261120   ;;  %v789_v2 = vmov (!%p206_p10), 0.0|0.0   ;;  %vm790_vm2 = vmmov (!%p206_p10), 0   ;;  %v791_v5 = vmov (!%p206_p10), 0.0  }
   0xf   : > { %209 = sbr.rel (%p206_p10) target bundleno = 310 (0x136), region = 36  ;;  %619 = vmatprep.subr.bf16.mxu0 (!%p206_p10), %v789_v2  ;;  %v620_v3 = vpack.c.bf16 (!%p206_p10), %v259_v1, %v258_v0  ;;  %vm881_vm1 = vmpackc.low (!%p206_p10), %vm281_vm0, %vm281_vm0  ;;  %616 = vmatprep.mubr.msk.f32.mxu0 (!%p206_p10), %vm790_vm2, %v791_v5  ;;  %v260_v6 = vld [vmem:[%s1008_s1 + $0x10] sm:$0xff] (!%p206_p10)  ;;  %v261_v7 = vld [vmem:[%s1008_s1 + $0x18] sm:$0xff] (!%p206_p10)  ;;  %p241_p11 = scmp.lt.s32.totalorder (!%p206_p10), %s779_s18, 1 }
  0x10   : > { %v624_v8 = vpack.c.bf16 (!%p206_p10), %v261_v7, %v260_v6  ;;  %v262_v9 = vld [vmem:[%s1008_s1 + $0x20] sm:$0xff] (!%p206_p10)  ;;  %v263_v10 = vld [vmem:[%s1008_s1 + $0x28] sm:$0xff] (!%p206_p10)  ;;  %v264_v12 = vld [vmem:[%s1008_s1 + $0x30] sm:$0xff] (!%p206_p10)  ;;  %s238_s8 = sand.u32 (!%p206_p10), 1, %s771_s16   ;;  %s564_s14 = sshll.u32 (!%p206_p10), %s779_s18, 7 }
  0x11   : > { %622 = vmatpush3.bf16.xpose.msk.msra.mxu0 (!%p206_p10), %vm881_vm1, %v620_v3  ;;  %v628_v11 = vpack.c.bf16 (!%p206_p10), %v263_v10, %v262_v9  ;;  %v265_v13 = vld [vmem:[%s1008_s1 + $0x38] sm:$0xff] (!%p206_p10)  ;;  %v266_v15 = vld [vmem:[%s1008_s1 + $0x40] sm:$0xff] (!%p206_p10)  ;;  %v267_v16 = vld [vmem:[%s1008_s1 + $0x48] sm:$0xff] (!%p206_p10)  ;;  %s542_s9 = sshll.u32 (!%p206_p10), %s238_s8, 3 }
  0x12   : > { %623 = vmatprep.subr.bf16.mxu0 (!%p206_p10), %v789_v2  ;;  %v632_v14 = vpack.c.bf16 (!%p206_p10), %v265_v13, %v264_v12  ;;  %v636_v17 = vpack.c.bf16 (!%p206_p10), %v267_v16, %v266_v15  ;;  %v268_v18 = vld [vmem:[%s1008_s1 + $0x50] sm:$0xff] (!%p206_p10)  ;;  %v269_v19 = vld [vmem:[%s1008_s1 + $0x58] sm:$0xff] (!%p206_p10)  ;;  %v270_v21 = vld [vmem:[%s1008_s1 + $0x60] sm:$0xff] (!%p206_p10)  ;;  %s240_s21 = scalar_lea.vmem (!%p206_p10), [#allocation2], %s542_s9 }
  0x13   : > { %v640_v20 = vpack.c.bf16 (!%p206_p10), %v269_v19, %v268_v18  ;;  %v271_v22 = vld [vmem:[%s1008_s1 + $0x68] sm:$0xff] (!%p206_p10)  ;;  %v272_v24 = vld [vmem:[%s1008_s1 + $0x70] sm:$0xff] (!%p206_p10)  ;;  %v273_v25 = vld [vmem:[%s1008_s1 + $0x78] sm:$0xff] (!%p206_p10)  ;;  %s427_s22 = sshll.u32 (!%p206_p10), %s240_s21, 4  ;;  %s962_s22 = int_to_ptr.vmem [resolvable:$true] %s427_s22 }
  0x14   : > { %v644_v23 = vpack.c.bf16 (!%p206_p10), %v271_v22, %v270_v21  ;;  %v648_v26 = vpack.c.bf16 (!%p206_p10), %v273_v25, %v272_v24  ;;  %v544_v28 = vld [vmem:[%s1009_s2] ss:$0 sm:$0xff] (!%p206_p10)  ;;  %s709_s5 = scalar_lea.vmem (!%p206_p10), %s962_s22, 128 }
  0x15   : > { %v562_v30 = vld [vmem:[%s1010_s3] ss:$0 sm:$0xff] (!%p206_p10)  ;;  %p710_p12 = scmp.ne.s32.totalorder (!%p206_p10), %s962_s22, %s709_s5 }
  0x16   : > { %s242_s29 = scalar_select %p241_p11, %s779_s18, 1 }
  0x17   : > { %p711_p13 = pnand %p710_p12, %p858_p4  ;;  %s792_s18 = smov [#allocation2]  }
  0x18   : > { %s543_s30 = sshll.u32 %s242_s29, 3  ;;  %s960_s29 = scalar_lea.hbm %s1011_s4, %s564_s14 }
  0x19   : > { %626 = vmatpush3.bf16.xpose.msk.msra.mxu0 %vm881_vm1, %v624_v8  ;;  %s244_s7 = scalar_lea.vmem %s1007_s0, %s543_s30  ;;  %s413_s30 = scalar_lea.sflag [#allocation3], %s238_s8 }
  0x1a   : > { %627 = vmatprep.subr.bf16.mxu0 %v789_v2  ;;  %v257_v27 = vld [vmem:[%s244_s7] sm:$0xff]  ;;  %p712_p0 = pneg %p711_p13  ;;  %s713_s6 = sshll.u32 %s792_s18, 4  ;;  %s714_s6 = int_to_ptr.vmem [resolvable:$false] %s713_s6 }
  0x1b   : > { %s715_s7 = scalar_lea.vmem %s714_s6, 256  ;;  %p716_p1 = scmp.lt.s32.totalorder %s962_s22, %s714_s6 }
  0x1c   : > { %p717_p2 = scmp.lt.s32.totalorder %s715_s7, %s709_s5 }
  0x1e   : > { %p718_p3 = por %p717_p2, %p716_p1 }
  0x20   : > { %p719_p5 = pnand %p718_p3, %p712_p0 }
  0x21   : > { %630 = vmatpush3.bf16.xpose.msk.msra.mxu0 %vm881_vm1, %v628_v11 }
  0x22   : > { %631 = vmatprep.subr.bf16.mxu0 %v789_v2 }
  0x29   : > { %634 = vmatpush3.bf16.xpose.msk.msra.mxu0 %vm881_vm1, %v632_v14 }
  0x2a   : > { %635 = vmatprep.subr.bf16.mxu0 %v789_v2 }
  0x31   : > { %638 = vmatpush3.bf16.xpose.msk.msra.mxu0 %vm881_vm1, %v636_v17 }
  0x32   : > { %639 = vmatprep.subr.bf16.mxu0 %v789_v2 }
  0x39   : > { %642 = vmatpush3.bf16.xpose.msk.msra.mxu0 %vm881_vm1, %v640_v20 }
  0x3a   : > { %643 = vmatprep.subr.bf16.mxu0 %v789_v2 }
  0x41   : > { %646 = vmatpush3.bf16.xpose.msk.msra.mxu0 %vm881_vm1, %v644_v23 }
  0x42   : > { %647 = vmatprep.subr.bf16.mxu0 %v789_v2 }
  0x49   : > { %650 = vmatpush3.bf16.xpose.msk.msra.mxu0 %vm881_vm1, %v648_v26 }
  0x50   : > { %617 = vmatmul.mubr.msk.f32.vlgmr.msra.gmra.mrb[0].mxu0 %vm281_vm0, %v257_v27 }
 0x123   : > { %v399_v29 = vpop.f32.mrb[0].mxu0 }
 0x124   : > { %v400_v31 = vadd.f32 %v544_v28, %v399_v29  ;;  %v618_v32 = vpop.f32.mrb[1].mxu0 }
 0x126   : > { %v410_v33 = vmul.f32 %v562_v30, %v400_v31 }
 0x128   : > { %411 = vst [vmem:[%s240_s21] sm:$0xff] %v410_v33 }
 0x129   : > { %722 = shalt.err (!%p719_p5)
}
 0x12a   : > { %s723_s8 = scalar_lea.hbm %s960_s29, 128  ;;  %s727_s11 = scalar_lea.hbm %s1011_s4, 256 }
 0x12b   : > { %p724_p6 = scmp.ne.s32.totalorder %s960_s29, %s723_s8  ;;  %p728_p10 = scmp.lt.u32.totalorder %s960_s29, %s1011_s4 }
 0x12c   : > { %p729_p11 = scmp.lt.u32.totalorder %s727_s11, %s723_s8  ;;  %p731_p13 = scmp.lt.u32.totalorder %s723_s8, %s960_s29 }
 0x12d   : > { %p725_p7 = pnand %p724_p6, %p858_p4 }
 0x12e   : > { %p730_p12 = por %p729_p11, %p728_p10 }
 0x12f   : > { %p726_p9 = pneg %p725_p7 }
 0x130   : > { %p732_p0 = por %p731_p13, %p730_p12 }
 0x132   : > { %p733_p1 = pnand %p732_p0, %p726_p9 }
 0x134   : > { %736 = shalt.err (!%p733_p1)
}
 0x135   : > { %651 = dma.vmem_to_hbm [thread:$0]  (%p858_p4), %s962_s22, 128, %s960_s29, %s413_s30  }
 0x136 PF: > { %p657_p2 = scmp.ge.s32.totalorder %s787_s20, 2  ;;  %s439_s14 = sand.u32 1, %s767_s15  }
 0x137   : > { %s440_s21 = scalar_lea.sflag [#allocation3], %s439_s14 }
 0x138   : > { %p654_p3 = pnand %p657_p2, %p865_p8 }
 0x13a   : > { %762 = dma.done.wait (!%p654_p3), %s440_s21, 128  }
 0x13b   : > { %764 = vsyncadd (!%p654_p3), %s440_s21, 4294967168  ;;  %s17_s20 = sadd.s32 1, %s787_s20   ;;  %s1016_s15 = smov %s771_s16 }
 0x13c   : > { %p14_p5 = scmp.ge.s32.totalorder %s17_s20, 4   ;;  %s1017_s16 = smov %s775_s17 }
 0x13d   : > { %s1018_s17 = smov %s871_s28  ;;  %s1019_s18 = smov %s783_s19 }
 0x13e   : > { %s1020_s19 = smov %s1022_s23  ;;  %16 = sbr.rel (!%p14_p5) target bundleno = 4 (0x4), region = 80 }
 0x145   :  { %445 = vsyncpa [#allocation3], 1 }
 0x146   :  { %447 = vsyncpa [#allocation3 + $0x1], 1 }

</bundles_post_ra>
